<compile_context>
chip_gen: v5e
topology: v5e:2x2
jax: 0.10.0
libtpu: 0.0.40
codegen_flags: <defaults>
</compile_context>

<pallas_src>
import numpy as np
import jax
import jax.numpy as jnp
from jax.experimental import pallas as pl
from jax.experimental.pallas import tpu as pltpu


def _round_up(v, m):
    return ((v + m - 1) // m) * m


# ---------------------------------------------------------------------------
# Host-side geometric glue (replicates multiply_quaternions_xp + query_within_angle)
# ---------------------------------------------------------------------------
def multiply_quaternions_np(q1, q2):
    if q1.ndim == 1:
        q1 = q1[np.newaxis, :]
    w1, x1, y1, z1 = q1[:, 3], q1[:, 0], q1[:, 1], q1[:, 2]
    w2, x2, y2, z2 = q2[:, 3], q2[:, 0], q2[:, 1], q2[:, 2]
    w = w1 * w2 - x1 * x2 - y1 * y2 - z1 * z2
    x = w1 * x2 + x1 * w2 + y1 * z2 - z1 * y2
    y = w1 * y2 - x1 * z2 + y1 * w2 + z1 * x2
    z = w1 * z2 + x1 * y2 - y1 * x2 + z1 * w2
    return np.stack([x, y, z, w], axis=-1)


def build_pool_tables(input_orients, output_orients, kernel_rel_quats, thr):
    """For each (output node, kernel point): closest input node within the
    angular threshold (or -1).  Pure precompute, independent of activations."""
    n_out = output_orients.shape[0]
    n_k = kernel_rel_quats.shape[0]
    idx = np.full((n_out, n_k), -1, dtype=np.int32)
    valid = np.zeros((n_out, n_k), dtype=np.float32)
    for i in range(n_out):
        targets = multiply_quaternions_np(output_orients[i], kernel_rel_quats)  # (K,4)
        for k in range(n_k):
            dots = np.abs(np.sum(input_orients * targets[k][None, :], axis=1))
            dots = np.clip(dots, -1.0, 1.0)
            angles = 2.0 * np.arccos(dots)
            matched = np.where(angles < thr)[0]
            if matched.size > 0:
                best = matched[np.argmin(angles[matched])]
                idx[i, k] = int(best)
                valid[i, k] = 1.0
    return idx, valid


def choose_tile_nout(n_out):
    """N_out tile: multiple of 8 (sublane), capped at 256 rows so the
    (K, tile, N_in) gather block stays within scoped VMEM on v5e/v6e/v7x."""
    n8 = _round_up(max(n_out, 1), 8)
    return min(256, n8)


def build_gather_operands(idx, valid, n_in, *, tile_nout, pool_type):
    """Kernel-ready operands, padded along N_out to a multiple of tile_nout."""
    n_out, K = idx.shape
    n_out_pad = _round_up(max(n_out, 1), tile_nout)
    if pool_type == "max":
        # Stacked one-hot gather (bf16 storage: exact for 0/1) + additive bias.
        G = np.zeros((K, n_out_pad, n_in), dtype=np.float32)
        bias = np.full((K, n_out_pad, 1), -np.inf, dtype=np.float32)
        for i in range(n_out):
            for k in range(K):
                if valid[i, k] > 0:
                    G[k, i, idx[i, k]] = 1.0
                    bias[k, i, 0] = 0.0
        return (jnp.asarray(G, dtype=jnp.bfloat16), jnp.asarray(bias))
    else:  # "avg": fold sum over kernel points and 1/clamp(count, 1) into one matrix.
        inv_cnt = 1.0 / np.maximum(valid.sum(axis=1), 1.0)          # (N_out,)
        Gsum = np.zeros((n_out_pad, n_in), dtype=np.float32)
        for i in range(n_out):
            for k in range(K):
                if valid[i, k] > 0:
                    Gsum[i, idx[i, k]] += inv_cnt[i]
        return (jnp.asarray(Gsum),)


# ---------------------------------------------------------------------------
# Pallas kernels
# ---------------------------------------------------------------------------
def _pool_max_kernel(x_ref, g_ref, bias_ref, o_ref):
    # x_ref:    (1, N_in, Cp)         one batch element, lane-dense C
    # g_ref:    (K, TN, N_in) bf16    stacked one-hot gather rows (0/1, exact)
    # bias_ref: (K, TN, 1)    f32     0.0 if matched else -inf
    # o_ref:    (1, TN, Cp)
    K, TN, n_in = g_ref.shape
    cp = x_ref.shape[2]
    # One stacked (K*TN, N_in) x (N_in, Cp) MXU matmul instead of K tiny ones.
    g = g_ref[...].astype(jnp.float32).reshape(K * TN, n_in)
    res = jnp.dot(g, x_ref[0], preferred_element_type=jnp.float32)   # (K*TN, Cp)
    res = res.reshape(K, TN, cp) + bias_ref[...]                     # additive 0 / -inf mask
    o_ref[0] = jnp.max(res, axis=0).astype(o_ref.dtype)


def _pool_avg_kernel(x_ref, g_ref, o_ref):
    # g_ref: (TN, N_in) f32 — already folds sum over kernel points and 1/count.
    o_ref[0] = jnp.dot(g_ref[...], x_ref[0],
                       preferred_element_type=jnp.float32).astype(o_ref.dtype)


def spherical_pool(x, operands, pool_type, *, tile_nout, n_out, c):
    """x: (B, N_in, C) float32 -> (B, N_out, C) float32 (module output layout)."""
    B, N_in, C = x.shape
    if n_out == 0:
        return jnp.zeros((B, 0, C), x.dtype)

    # Lane-dense output: pad channels to a multiple of 128 (sliced off below).
    Cp = _round_up(C, 128)
    if Cp != C:
        x = jnp.pad(x, ((0, 0), (0, 0), (0, Cp - C)))

    if pool_type == "max":
        G, bias = operands
        K, n_out_pad, _ = G.shape
        grid = (n_out_pad // tile_nout, B)        # N_out tiles outer, batch inner
        out = pl.pallas_call(
            _pool_max_kernel,
            out_shape=jax.ShapeDtypeStruct((B, n_out_pad, Cp), x.dtype),
            grid=grid,
            in_specs=[
                pl.BlockSpec((1, N_in, Cp), lambda j, b: (b, 0, 0)),
                pl.BlockSpec((K, tile_nout, N_in), lambda j, b: (0, j, 0)),
                pl.BlockSpec((K, tile_nout, 1), lambda j, b: (0, j, 0)),
            ],
            out_specs=pl.BlockSpec((1, tile_nout, Cp), lambda j, b: (b, j, 0)),
            compiler_params=pltpu.CompilerParams(
                dimension_semantics=("parallel", "parallel")),
        )(x, G, bias)
    else:  # "avg"
        (Gsum,) = operands
        n_out_pad = Gsum.shape[0]
        grid = (n_out_pad // tile_nout, B)
        out = pl.pallas_call(
            _pool_avg_kernel,
            out_shape=jax.ShapeDtypeStruct((B, n_out_pad, Cp), x.dtype),
            grid=grid,
            in_specs=[
                pl.BlockSpec((1, N_in, Cp), lambda j, b: (b, 0, 0)),
                pl.BlockSpec((tile_nout, N_in), lambda j, b: (j, 0)),
            ],
            out_specs=pl.BlockSpec((1, tile_nout, Cp), lambda j, b: (b, j, 0)),
            compiler_params=pltpu.CompilerParams(
                dimension_semantics=("parallel", "parallel")),
        )(x, Gsum)

    return out[:, :n_out, :c]


# ---------------------------------------------------------------------------
# Pure-NumPy reference of the pooling (same semantics as the torch forward)
# ---------------------------------------------------------------------------
def ref_pool(x_np, idx, valid, pool_type):
    B, N_in, C = x_np.shape
    N_out, K = idx.shape
    out = np.zeros((B, N_out, C), dtype=x_np.dtype)
    for i in range(N_out):
        if pool_type == "max":
            g = np.full((B, C, K), -np.inf, dtype=x_np.dtype)
        else:
            g = np.zeros((B, C, K), dtype=x_np.dtype)
        cnt = 0
        for k in range(K):
            if valid[i, k] > 0:
                g[:, :, k] = x_np[:, idx[i, k], :]
                cnt += 1
        if pool_type == "max":
            out[:, i, :] = g.max(axis=-1)
        else:
            out[:, i, :] = g.sum(axis=-1) / max(cnt, 1)
    return out


def _axis_angle_quat(axis, angle):
    axis = np.asarray(axis, dtype=np.float64)
    axis = axis / np.linalg.norm(axis)
    return np.concatenate([axis * np.sin(angle / 2.0), [np.cos(angle / 2.0)]])


if __name__ == "__main__":
    B, N_in, C = 2, 16, 32
    key = jax.random.PRNGKey(0)
    kx, kq = jax.random.split(key)

    # Activations (B, N_in, C) — the tensor the module's forward receives.
    x = jax.random.normal(kx, (B, N_in, C), dtype=jnp.float32)

    # Deterministic synthetic orientation sets (unit quaternions, [x,y,z,w]).
    q = np.asarray(jax.random.normal(kq, (N_in, 4)), dtype=np.float64)
    input_orients = q / np.linalg.norm(q, axis=1, keepdims=True)
    output_orients = input_orients[::2].copy()                  # N_out = 8
    kernel_rel = np.stack([
        _axis_angle_quat([1, 0, 0], 0.0),
        _axis_angle_quat([1, 0, 0], 0.05),
        _axis_angle_quat([0, 1, 0], 0.05),
        _axis_angle_quat([0, 0, 1], 0.05),
        _axis_angle_quat([1, 0, 0], 1.5),   # far rotation -> exercises "no match"
    ])                                                           # K = 5
    angular_threshold_rad = 0.15

    # Precompute matching tables (host-side glue; activation-independent).
    idx, valid = build_pool_tables(input_orients, output_orients,
                                   kernel_rel, angular_threshold_rad)
    N_out, K = idx.shape
    tile_nout = choose_tile_nout(N_out)

    x_np = np.asarray(x)
    for pool_type in ("max", "avg"):
        operands = build_gather_operands(idx, valid, N_in,
                                         tile_nout=tile_nout, pool_type=pool_type)
        out = spherical_pool(x, operands, pool_type,
                             tile_nout=tile_nout, n_out=N_out, c=C)
        out = jax.block_until_ready(out)
        ref = ref_pool(x_np, idx, valid, pool_type)
        assert out.shape == (B, N_out, C)
        assert np.allclose(np.asarray(out), ref, atol=1e-5), f"mismatch ({pool_type})"

    print("KERNEL_OK")
</pallas_src>

<mosaic_0001>
module attributes {stable_mosaic.version = 11 : i64} {
  func.func @_pool_max_kernel(%arg0: i32, %arg1: i32, %arg2: memref<1x16x128xf32, #tpu.memory_space<vmem>>, %arg3: memref<5x8x16xbf16, #tpu.memory_space<vmem>>, %arg4: memref<5x8x1xf32, #tpu.memory_space<vmem>>, %arg5: memref<1x8x128xf32, #tpu.memory_space<vmem>>) attributes {dimension_semantics = [#tpu.dimension_semantics<parallel>, #tpu.dimension_semantics<parallel>], iteration_bounds = array<i64: 1, 2>, scalar_prefetch = 0 : i64, scratch_operands = 0 : i64, tpu.core_type = #tpu.core_type<tc>, window_params = [{transform_indices = @transform_0, window_bounds = array<i64: 1, 16, 128>}, {transform_indices = @transform_1, window_bounds = array<i64: 5, 8, 16>}, {transform_indices = @transform_2, window_bounds = array<i64: 5, 8, 1>}, {transform_indices = @transform_3, window_bounds = array<i64: 1, 8, 128>}]} {
    %c0 = arith.constant 0 : index
    %c0_0 = arith.constant 0 : index
    %c0_1 = arith.constant 0 : index
    %0 = vector.load %arg3[%c0, %c0_0, %c0_1] : memref<5x8x16xbf16, #tpu.memory_space<vmem>>, vector<5x8x16xbf16>
    %1 = arith.extf %0 : vector<5x8x16xbf16> to vector<5x8x16xf32>
    %2 = vector.shape_cast %1 : vector<5x8x16xf32> to vector<40x16xf32>
    %c0_2 = arith.constant 0 : index
    %c0_3 = arith.constant 0 : index
    %c0_4 = arith.constant 0 : index
    %3 = vector.load %arg2[%c0_2, %c0_3, %c0_4] : memref<1x16x128xf32, #tpu.memory_space<vmem>>, vector<1x16x128xf32>
    %4 = vector.shape_cast %3 : vector<1x16x128xf32> to vector<16x128xf32>
    %cst = arith.constant dense<0.000000e+00> : vector<40x128xf32>
    %5 = tpu.matmul %2, %4, %cst {dimension_numbers = #tpu.dot_dimension_numbers<[1], [0], [0], [1], [0, 0, 1, 1], [], []>} : vector<40x16xf32>, vector<16x128xf32>, vector<40x128xf32> -> vector<40x128xf32>
    %6 = vector.shape_cast %5 : vector<40x128xf32> to vector<5x8x128xf32>
    %c0_5 = arith.constant 0 : index
    %c0_6 = arith.constant 0 : index
    %c0_7 = arith.constant 0 : index
    %7 = vector.load %arg4[%c0_5, %c0_6, %c0_7] : memref<5x8x1xf32, #tpu.memory_space<vmem>>, vector<5x8x1xf32>
    %8 = vector.broadcast %7 : vector<5x8x1xf32> to vector<5x8x128xf32>
    %9 = arith.addf %6, %8 : vector<5x8x128xf32>
    %cst_8 = arith.constant dense<0xFF800000> : vector<8x128xf32>
    %10 = vector.multi_reduction <maximumf>, %9, %cst_8 [0] : vector<5x8x128xf32> to vector<8x128xf32>
    %c0_9 = arith.constant 0 : index
    %c0_10 = arith.constant 0 : index
    %c0_11 = arith.constant 0 : index
    %11 = vector.load %arg5[%c0_9, %c0_10, %c0_11] : memref<1x8x128xf32, #tpu.memory_space<vmem>>, vector<1x8x128xf32>
    %12 = vector.shape_cast %11 : vector<1x8x128xf32> to vector<8x128xf32>
    %13 = vector.shape_cast %10 : vector<8x128xf32> to vector<1x8x128xf32>
    tpu.vector_store %arg5[%c0_9, %c0_10, %c0_11], %13 {strides = array<i32>} : memref<1x8x128xf32, #tpu.memory_space<vmem>>, vector<1x8x128xf32>,
    return
  }
  func.func @transform_0(%arg0: i32, %arg1: i32) -> (i32, i32, i32) {
    %c0_i32 = arith.constant 0 : i32
    %c0_i32_0 = arith.constant 0 : i32
    %c0_i32_1 = arith.constant 0 : i32
    return %arg1, %c0_i32, %c0_i32_0 : i32, i32, i32
  }
  func.func @transform_1(%arg0: i32, %arg1: i32) -> (i32, i32, i32) {
    %c0_i32 = arith.constant 0 : i32
    %c0_i32_0 = arith.constant 0 : i32
    %c0_i32_1 = arith.constant 0 : i32
    return %c0_i32, %arg0, %c0_i32_0 : i32, i32, i32
  }
  func.func @transform_2(%arg0: i32, %arg1: i32) -> (i32, i32, i32) {
    %c0_i32 = arith.constant 0 : i32
    %c0_i32_0 = arith.constant 0 : i32
    %c0_i32_1 = arith.constant 0 : i32
    return %c0_i32, %arg0, %c0_i32_0 : i32, i32, i32
  }
  func.func @transform_3(%arg0: i32, %arg1: i32) -> (i32, i32, i32) {
    %c0_i32 = arith.constant 0 : i32
    %c0_i32_0 = arith.constant 0 : i32
    return %arg1, %arg0, %c0_i32 : i32, i32, i32
  }
}

</mosaic_0001>

<bundles_post_ra>
// kernel: tpu_custom_call.1
= control target key start
LH: loop header
LB: loop body
LE: loop exit
PB: predicated region body
PF: predicated region fallthrough
CT: control target
= control target key end

     0   :  { %8 = vsyncpa [#allocation3], 0  ;;  %s804_s0 = inlined_call_operand.vmem [shape: f32[2,16,128], index: 0, kind: input, shape index: {}]   ;;  %s805_s1 = inlined_call_operand.hbm [shape: bf16[5,8,16], index: 1, kind: input, shape index: {}]   ;;  %s806_s2 = inlined_call_operand.vmem [shape: f32[5,8,1], index: 2, kind: input, shape index: {}]   ;;  %s807_s3 = inlined_call_operand.hbm [shape: f32[2,8,128], index: 3, kind: output, shape index: {}]  }
   0x1   :  { %9 = vsyncpa [#allocation4], 0 }
   0x2   :  { %11 = vsyncpa [#allocation4 + $0x1], 0  ;;  %s684_s12 = smov 0   ;;  %s686_s13 = smov 0  }
   0x3   :  { %s688_s14 = smov 0   ;;  %s690_s15 = smov 0  }
   0x4   :  { %s692_s16 = smov 0   ;;  %s694_s17 = smov 0  }
   0x5 LB: > { %s438_s18 = sadd.s32 4294967295, %s658_s17   ;;  %s439_s19 = sadd.s32 4294967294, %s658_s17   ;;  %s658_s17 = sphi %s694_s17, %s17_s17   ;;  %s654_s16 = sphi %s692_s16, %s814_s16   ;;  %s650_s15 = sphi %s690_s15, %s813_s15   ;;  %s646_s14 = sphi %s688_s14, %s812_s14   ;;  %s642_s13 = sphi %s686_s13, %s811_s13   ;;  %s638_s12 = sphi %s684_s12, %s810_s12  }
   0x6   : > { %s26_s20 = sadd.s32 1, %s654_s16  ;;  %s116_s21 = sadd.s32 1, %s646_s14 }
   0x7   : > { %p27_p0 = scmp.ge.s32.totalorder %s26_s20, 2  ;;  %p126_p1 = scmp.ne.s32.totalorder %s646_s14, %s642_s13 }
   0x8   : > { %p127_p2 = scmp.eq.s32.totalorder %s438_s18, 1  ;;  %p132_p3 = scmp.ne.s32.totalorder %s642_s13, %s638_s12 }
   0x9   : > { %s816_s20 = smov (%p27_p0, %s26_s20), 0  ;;  %p133_p5 = scmp.eq.s32.totalorder %s439_s19, 1 }
   0xa   : > { %p724_p4 = por %p127_p2, %p126_p1  ;;  %s111_s23 = ssub.s32 %s654_s16, %s816_s20 }
   0xb   : > { %p440_p6 = scmp.ge.s32.totalorder %s658_s17, 1  ;;  %p114_p7 = scmp.eq.s32.totalorder %s111_s23, 0 }
   0xc   : > { %p731_p8 = por %p133_p5, %p132_p3  ;;  %p140_p9 = scmp.lt.s32.totalorder %s658_s17, 3 }
   0xd   : > { %s737_s25 = scalar_select %p114_p7, %s646_s14, %s116_s21  }
   0xe   : > { %p141_p10 = pnand %p440_p6, %p140_p9  ;;  %p488_p11 = scmp.eq.s32.totalorder %s438_s18, 0 }
   0xf   : > { %s153_s28 = sshll.u32 %s805_s1, 4  ;;  %s660_s29 = smov [#allocation2]   ;;  %s154_s28 = int_to_ptr.hbm [resolvable:$true] %s153_s28 }
  0x10   : > { %p480_p12 = pneg %p141_p10  ;;  %s155_s30 = sshll.u32 %s660_s29, 4  ;;  %s156_s30 = int_to_ptr.vmem [resolvable:$true] %s155_s30 }
  0x11   : > { %s661_s4 = smov 64   ;;  %s662_s5 = smov 4  }
  0x12   : > { %p481_p13 = pnand %p488_p11, %p480_p12  ;;  %186 = sbr.rel (%p141_p10) target bundleno = 183 (0xb7), region = 32 }
  0x14   : > { %483 = dma.hbm_to_vmem [thread:$0]  (!%p481_p13), %s154_s28, 320, %s156_s30, [#allocation3], %s661_s4, %s661_s4, %s662_s5  }
  0x17   : > { %629 = dma.done.wait (%p488_p11), [#allocation3], 320  }
  0x18   : > { %631 = vsyncadd (%p488_p11), [#allocation3], 4294966976  ;;  %p215_p0 = scmp.lt.s32.totalorder %s650_s15, 1  ;;  %v663_v0 = vmov 0   ;;  %v467_v3 = vld [vmem:[#allocation2 + $0x8] sm:$0xff]   ;;  %vm236_vm0 = vcmask 130048  }
  0x19   : > { %543 = vset.pattern.permute.xlu0 %v663_v0  ;;  %544 = vset.pattern.permute.xlu1 %v663_v0  ;;  %v465_v4 = vunpack.c.l.bf16 %v467_v3  ;;  %v228_v5 = vld [vmem:[#allocation2 + $0x10] sm:$0xf]  ;;  %v460_v6 = vld [vmem:[#allocation2] sm:$0xff]   ;;  %v285_v11 = vld [vmem:[%s806_s2 + $0x8] sm:$0xff]  ;;  %v466_v13 = vunpack.c.h.bf16 %v467_v3  ;;  %s212_s4 = sand.u32 1, %s642_s13   ;;  %s596_s27 = scalar_lea.hbm %s807_s3, 16 }
  0x1a   : > { %s216_s6 = scalar_select %p215_p0, %s650_s15, 1  ;;  %545 = vset.pattern.permute.xlu2 %v663_v0  ;;  %v233_v7 = vunpack.c.l.bf16 %v228_v5  ;;  %v461_v8 = vunpack.c.l.bf16 %v460_v6  ;;  %v462_v9 = vunpack.c.h.bf16 %v460_v6  ;;  %v284_v10 = vld [vmem:[%s806_s2] sm:$0xff]  ;;  %v287_v12 = vld [vmem:[%s806_s2 + $0x18] sm:$0xff]  ;;  %296 = vperm.xlu1 %544, %v285_v11   ;;  %v286_v15 = vld [vmem:[%s806_s2 + $0x10] sm:$0xff] }
  0x1b   : > { %291 = vperm.xlu0 %543, %v284_v10   ;;  %306 = vperm.xlu2 %545, %v287_v12   ;;  %v288_v14 = vld [vmem:[%s806_s2 + $0x20] sm:$0xff]  ;;  %s446_s5 = sshll.u32 %s212_s4, 3 }
  0x1c   : > { %s458_s7 = sshll.u32 %s216_s6, 4  ;;  %s455_s6 = sshll.u32 %s650_s15, 3 }
  0x1d   : > { %s219_s10 = scalar_lea.vmem %s804_s0, %s458_s7  ;;  %s336_s9 = scalar_lea.hbm %s807_s3, %s455_s6 }
  0x1e   : > { %v235_v1 = vld [vmem:[%s219_s10 + $0x8] sm:$0xff]  ;;  %v234_v2 = vld [vmem:[%s219_s10] sm:$0xff]  ;;  %s214_s10 = scalar_lea.vmem [#allocation5], %s446_s5  ;;  %s340_s18 = sshll.u32 %s336_s9, 4  ;;  %s341_s18 = int_to_ptr.hbm [resolvable:$true] %s340_s18 }
  0x1f   : > { %469 = vmatpush.msra.mxu2 %v235_v1  ;;  %470 = vmatpush.msra.mxu3 %v235_v1  ;;  %s338_s11 = sshll.u32 %s214_s10, 4  ;;  %s325_s15 = scalar_lea.sflag [#allocation4], %s212_s4  ;;  %s339_s11 = int_to_ptr.vmem [resolvable:$true] %s338_s11 }
  0x20   : > { %266 = vmatpush.msra.mxu0 %v235_v1  ;;  %468 = vmatpush.msra.mxu1 %v235_v1  ;;  %s590_s19 = sshra.s32 %s341_s18, 4  ;;  %s591_s19 = int_to_ptr.hbm [resolvable:$true] %s590_s19 }
  0x21   : > { %472 = vmatpush.msra.mxu2 %v234_v2  ;;  %473 = vmatpush.msra.mxu3 %v234_v2  ;;  %s592_s21 = scalar_lea.hbm %s591_s19, 8  ;;  %p597_p5 = scmp.lt.s32.totalorder %s591_s19, %s807_s3 }
  0x22   : > { %451 = vmatmul.msk.f32.vlgmr.msra.gmra.mxu2 %vm236_vm0, %v465_v4  ;;  %453 = vmatmul.msk.f32.vlgmr.msra.gmra.mxu3 %vm236_vm0, %v233_v7  ;;  %p593_p1 = scmp.ne.s32.totalorder %s591_s19, %s592_s21  ;;  %p598_p6 = scmp.lt.s32.totalorder %s596_s27, %s592_s21 }
  0x23   : > { %267 = vmatpush.msra.mxu0 %v234_v2  ;;  %471 = vmatpush.msra.mxu1 %v234_v2 }
  0x24   : > { %449 = vmatmul.msk.f32.vlgmr.msra.gmra.mxu0 %vm236_vm0, %v461_v8  ;;  %450 = vmatmul.msk.f32.vlgmr.msra.gmra.mxu1 %vm236_vm0, %v462_v9  ;;  %p594_p2 = pnand %p593_p1, %p724_p4  ;;  %p599_p7 = por %p598_p6, %p597_p5 }
  0x25   : > { %311 = vperm.xlu0 %543, %v288_v14   ;;  %301 = vperm.xlu1 %544, %v286_v15  }
  0x26   : > { %p595_p3 = pneg %p594_p2 }
  0x28   : > { %p600_p9 = pnand %p599_p7, %p595_p3 }
  0x2a   : > { %452 = vmatmul.msk.f32.gmra.mxu2 %vm236_vm0, %v466_v13 }
  0x75   : > { %v307_v24 = vpop.permute.xlu2 %306 }
  0x8c   : > { %v297_v17 = vpop.permute.xlu1 %296 }
  0x8d   : > { %v292_v16 = vpop.permute.xlu0 %291 }
  0x97   : > { %v312_v20 = vpop.permute.xlu0 %311  ;;  %v302_v25 = vpop.permute.xlu1 %301 }
  0xa1   : > { %v269_v21 = vpop.f32.mrf.mxu0  ;;  %v272_v26 = vpop.f32.mrf.mxu1 }
  0xa2   : > { %v314_v23 = vadd.f32 %v292_v16, %v269_v21  ;;  %v315_v29 = vadd.f32 %v297_v17, %v272_v26 }
  0xa5   : > { %v275_v18 = vpop.f32.mrf.mxu2  ;;  %v281_v19 = vpop.f32.mrf.mxu3 }
  0xa6   : > { %v318_v22 = vadd.f32 %v312_v20, %v281_v19  ;;  %v316_v30 = vadd.f32 %v302_v25, %v275_v18 }
  0xa8   : > { %v319_v27 = vmax.f32 %v314_v23, %v318_v22 }
  0xaa   : > { %v320_v32 = vmax.f32 %v319_v27, %v315_v29 }
  0xad   : > { %v278_v28 = vpop.f32.mrf.mxu2 }
  0xae   : > { %v317_v31 = vadd.f32 %v307_v24, %v278_v28 }
  0xb0   : > { %v321_v33 = vmax.f32 %v316_v30, %v317_v31 }
  0xb2   : > { %v322_v34 = vmax.f32 %v320_v32, %v321_v33 }
  0xb4   : > { %323 = vst [vmem:[%s214_s10] sm:$0xff] %v322_v34 }
  0xb5   : > { %603 = shalt.err (!%p600_p9)
}
  0xb6   : > { %478 = dma.vmem_to_hbm [thread:$0]  (%p724_p4), %s339_s11, 128, %s341_s18, %s325_s15  }
  0xb7 PF: > { %p490_p10 = scmp.ge.s32.totalorder %s658_s17, 2  ;;  %s352_s30 = sand.u32 1, %s638_s12  }
  0xb8   : > { %s353_s4 = scalar_lea.sflag [#allocation4], %s352_s30 }
  0xb9   : > { %p485_p11 = pnand %p490_p10, %p731_p8 }
  0xbb   : > { %p486_p12 = pneg %p485_p11 }
  0xbd   : > { %633 = dma.done.wait (%p486_p12), %s353_s4, 128  }
  0xbe   : > { %635 = vsyncadd (%p486_p12), %s353_s4, 4294967168  ;;  %s17_s17 = sadd.s32 1, %s658_s17   ;;  %s810_s12 = smov %s642_s13 }
  0xbf   : > { %p14_p13 = scmp.ge.s32.totalorder %s17_s17, 4   ;;  %s811_s13 = smov %s646_s14 }
  0xc0   : > { %s812_s14 = smov %s737_s25  ;;  %s813_s15 = smov %s654_s16 }
  0xc1   : > { %s814_s16 = smov %s816_s20  ;;  %16 = sbr.rel (!%p14_p13) target bundleno = 5 (0x5), region = 76 }
  0xc6   :  { %359 = vsyncpa [#allocation3], 1 }
  0xc7   :  { %361 = vsyncpa [#allocation3 + $0x1], 1 }
  0xc8   :  { %362 = vsyncpa [#allocation4], 1 }
  0xc9   :  { %364 = vsyncpa [#allocation4 + $0x1], 1 }

</bundles_post_ra>
